<compile_context>
chip_gen: v6e
topology: v6e:2x2x1
jax: 0.10.0
libtpu: 0.0.40
codegen_flags: <defaults>
</compile_context>

<pallas_src>
import functools

import jax
import jax.numpy as jnp
from jax.experimental import pallas as pl
from jax.experimental.pallas import tpu as pltpu


def _mlp_kernel(x_ref, w1_ref, b1_ref, w2_ref, b2_ref, w3_ref, b3_ref, o_ref):
    # fc1 + relu : (bb, inc) @ (inc, 64) -> (bb, 64), bf16 MXU, f32 accumulate
    x_bf = x_ref[...].astype(jnp.bfloat16)
    h1 = jnp.dot(x_bf, w1_ref[...], preferred_element_type=jnp.float32)
    h1 = jnp.maximum(h1 + b1_ref[...], 0.0)

    # fc2 + relu : (bb, 64) @ (64, 32) -> (bb, 32)
    h2 = jnp.dot(h1.astype(jnp.bfloat16), w2_ref[...],
                 preferred_element_type=jnp.float32)
    h2 = jnp.maximum(h2 + b2_ref[...], 0.0)

    # fc3 : (bb, 32) . (32,) -> (bb,)   on VPU/XLU (frees the MXU slot, avoids a
    # 1-lane-wide MXU result).  w3_ref is a (1, 32) row vector, b3 is an SMEM
    # scalar.  Result is written lane-dense as one (1, bb) output row.
    h3 = jnp.sum(h2 * w3_ref[...], axis=-1) + b3_ref[0, 0]
    o_ref[0, :] = h3.astype(o_ref.dtype)


def _round_up(n, m):
    return ((n + m - 1) // m) * m


@functools.partial(jax.jit, static_argnames=("block_b",))
def discriminator_forward(x, params, *, block_b=512):
    """Forward pass of `discriminator`. x: (B, inc) float32 -> (B, 1) float32.

    reverse=True / eta only affect the backward pass (gradient reversal); the
    forward result is identical, so they are not inputs here.
    """
    w1, b1, w2, b2, w3, b3 = params
    B, inc = x.shape

    # Effective batch tile: multiple of 128 (lane-dense output rows), no larger
    # than the (padded) batch.  Per-step VMEM is ~2 * bb * inc * 2B (bf16 would
    # halve it further if the caller passes bf16 x) -- tiny for inc=128, and
    # well under v7x's 32 MiB scoped-VMEM default for bb <= 2048.
    bb = max(128, (block_b // 128) * 128)
    bb = min(bb, _round_up(B, 128))
    B_pad = _round_up(B, bb)
    n_tiles = B_pad // bb

    if B_pad != B:
        x = jnp.pad(x, ((0, B_pad - B), (0, 0)))

    # bf16 weights for the MXU matmuls (tiny, cast once per call); fc3 weight
    # as an f32 row vector for the VPU reduction.
    w1b = w1.astype(jnp.bfloat16)
    w2b = w2.astype(jnp.bfloat16)
    w3r = w3.reshape(1, w3.shape[0]).astype(jnp.float32)   # (32, 1) -> (1, 32)

    full = lambda i: (0, 0)  # weights / biases are resident across all tiles

    out = pl.pallas_call(
        _mlp_kernel,
        out_shape=jax.ShapeDtypeStruct((n_tiles, bb), jnp.float32),
        grid_spec=pltpu.PrefetchScalarGridSpec(
            num_scalar_prefetch=0,
            grid=(n_tiles,),
            in_specs=[
                pl.BlockSpec((bb, inc), lambda i: (i, 0)),        # x tile
                pl.BlockSpec(w1b.shape, full),                    # (inc, 64) bf16
                pl.BlockSpec(b1.shape, full),                     # (1, 64)  f32
                pl.BlockSpec(w2b.shape, full),                    # (64, 32) bf16
                pl.BlockSpec(b2.shape, full),                     # (1, 32)  f32
                pl.BlockSpec(w3r.shape, full),                    # (1, 32)  f32
                pl.BlockSpec(memory_space=pltpu.MemorySpace.SMEM),  # b3 (1,1)
            ],
            out_specs=pl.BlockSpec((1, bb), lambda i: (i, 0)),    # lane-dense row
        ),
        compiler_params=pltpu.CompilerParams(
            dimension_semantics=("parallel",),   # batch tiles shard across TCs
        ),
    )(x, w1b, b1, w2b, b2, w3r, b3)

    # Free layout plumbing back to the module's (B, 1) output.
    return out.reshape(-1, 1)[:B]


def init_params(key, inc=128):
    """nn.Linear-style init (uniform +- 1/sqrt(fan_in)); weights are (in, out)."""
    dims = [(inc, 64), (64, 32), (32, 1)]
    params = []
    for (fan_in, fan_out) in dims:
        key, kw, kb = jax.random.split(key, 3)
        bound = 1.0 / jnp.sqrt(float(fan_in))
        w = jax.random.uniform(kw, (fan_in, fan_out), jnp.float32, -bound, bound)
        b = jax.random.uniform(kb, (1, fan_out), jnp.float32, -bound, bound)
        params.extend([w, b])
    return tuple(params)


def reference_forward_f32(x, params):
    w1, b1, w2, b2, w3, b3 = params
    h = jnp.maximum(x @ w1 + b1, 0.0)
    h = jnp.maximum(h @ w2 + b2, 0.0)
    return h @ w3 + b3


def reference_forward_bf16(x, params):
    """Matches the kernel's bf16-matmul / f32-accumulate numerics."""
    w1, b1, w2, b2, w3, b3 = params
    h = jnp.dot(x.astype(jnp.bfloat16), w1.astype(jnp.bfloat16),
                preferred_element_type=jnp.float32)
    h = jnp.maximum(h + b1, 0.0)
    h = jnp.dot(h.astype(jnp.bfloat16), w2.astype(jnp.bfloat16),
                preferred_element_type=jnp.float32)
    h = jnp.maximum(h + b2, 0.0)
    return jnp.dot(h, w3, preferred_element_type=jnp.float32) + b3


if __name__ == "__main__":
    key = jax.random.PRNGKey(0)
    k_x, k_p = jax.random.split(key)

    B, inc = 8, 128
    x = jax.random.normal(k_x, (B, inc), jnp.float32)
    params = init_params(k_p, inc=inc)

    out = discriminator_forward(x, params, block_b=512)
    out = jax.block_until_ready(out)
    assert out.shape == (B, 1), out.shape

    # Tight check against a numerics-matched (bf16-matmul) reference.
    ref_bf16 = reference_forward_bf16(x, params)
    assert jnp.allclose(out, ref_bf16, atol=1e-3, rtol=1e-3), (
        f"max abs err vs bf16 ref {jnp.max(jnp.abs(out - ref_bf16))}"
    )
    # Loose check against the original fp32 module semantics.
    ref_f32 = reference_forward_f32(x, params)
    assert jnp.allclose(out, ref_f32, atol=5e-2, rtol=5e-2), (
        f"max abs err vs f32 ref {jnp.max(jnp.abs(out - ref_f32))}"
    )

    print("KERNEL_OK")
</pallas_src>

<mosaic_0001>
module attributes {stable_mosaic.version = 11 : i64} {
  func.func @_mlp_kernel(%arg0: i32, %arg1: memref<128x128xf32, #tpu.memory_space<vmem>>, %arg2: memref<128x64xbf16, #tpu.memory_space<vmem>>, %arg3: memref<1x64xf32, #tpu.memory_space<vmem>>, %arg4: memref<64x32xbf16, #tpu.memory_space<vmem>>, %arg5: memref<1x32xf32, #tpu.memory_space<vmem>>, %arg6: memref<1x32xf32, #tpu.memory_space<vmem>>, %arg7: memref<1x1xf32, #tpu.memory_space<smem>>, %arg8: memref<1x128xf32, #tpu.memory_space<vmem>>) attributes {dimension_semantics = [#tpu.dimension_semantics<parallel>], iteration_bounds = array<i64: 1>, scalar_prefetch = 0 : i64, scratch_operands = 0 : i64, tpu.core_type = #tpu.core_type<tc>, window_params = [{transform_indices = @transform_0, window_bounds = array<i64: 128, 128>}, {pipeline_mode = #tpu.pipeline_mode<synchronous>, transform_indices = @transform_1, window_bounds = array<i64: 128, 64>}, {pipeline_mode = #tpu.pipeline_mode<synchronous>, transform_indices = @transform_2, window_bounds = array<i64: 1, 64>}, {pipeline_mode = #tpu.pipeline_mode<synchronous>, transform_indices = @transform_3, window_bounds = array<i64: 64, 32>}, {pipeline_mode = #tpu.pipeline_mode<synchronous>, transform_indices = @transform_4, window_bounds = array<i64: 1, 32>}, {pipeline_mode = #tpu.pipeline_mode<synchronous>, transform_indices = @transform_5, window_bounds = array<i64: 1, 32>}, {transform_indices = @transform_6, window_bounds = array<i64: 1, 1>}, {transform_indices = @transform_7, window_bounds = array<i64: 1, 128>}]} {
    %c0 = arith.constant 0 : index
    %c0_0 = arith.constant 0 : index
    %0 = vector.load %arg1[%c0, %c0_0] : memref<128x128xf32, #tpu.memory_space<vmem>>, vector<128x128xf32>
    %1 = arith.truncf %0 : vector<128x128xf32> to vector<128x128xbf16>
    %c0_1 = arith.constant 0 : index
    %c0_2 = arith.constant 0 : index
    %2 = vector.load %arg2[%c0_1, %c0_2] : memref<128x64xbf16, #tpu.memory_space<vmem>>, vector<128x64xbf16>
    %cst = arith.constant dense<0.000000e+00> : vector<128x64xf32>
    %3 = tpu.matmul %1, %2, %cst {dimension_numbers = #tpu.dot_dimension_numbers<[1], [0], [0], [1], [0, 0, 1, 1], [], []>} : vector<128x128xbf16>, vector<128x64xbf16>, vector<128x64xf32> -> vector<128x64xf32>
    %c0_3 = arith.constant 0 : index
    %c0_4 = arith.constant 0 : index
    %4 = vector.load %arg3[%c0_3, %c0_4] : memref<1x64xf32, #tpu.memory_space<vmem>>, vector<1x64xf32>
    %5 = vector.broadcast %4 : vector<1x64xf32> to vector<128x64xf32>
    %6 = arith.addf %3, %5 : vector<128x64xf32>
    %cst_5 = arith.constant 0.000000e+00 : f32
    %7 = vector.broadcast %cst_5 : f32 to vector<128x64xf32>
    %8 = arith.maximumf %6, %7 : vector<128x64xf32>
    %9 = arith.truncf %8 : vector<128x64xf32> to vector<128x64xbf16>
    %c0_6 = arith.constant 0 : index
    %c0_7 = arith.constant 0 : index
    %10 = vector.load %arg4[%c0_6, %c0_7] : memref<64x32xbf16, #tpu.memory_space<vmem>>, vector<64x32xbf16>
    %cst_8 = arith.constant dense<0.000000e+00> : vector<128x32xf32>
    %11 = tpu.matmul %9, %10, %cst_8 {dimension_numbers = #tpu.dot_dimension_numbers<[1], [0], [0], [1], [0, 0, 1, 1], [], []>} : vector<128x64xbf16>, vector<64x32xbf16>, vector<128x32xf32> -> vector<128x32xf32>
    %c0_9 = arith.constant 0 : index
    %c0_10 = arith.constant 0 : index
    %12 = vector.load %arg5[%c0_9, %c0_10] : memref<1x32xf32, #tpu.memory_space<vmem>>, vector<1x32xf32>
    %13 = vector.broadcast %12 : vector<1x32xf32> to vector<128x32xf32>
    %14 = arith.addf %11, %13 : vector<128x32xf32>
    %cst_11 = arith.constant 0.000000e+00 : f32
    %15 = vector.broadcast %cst_11 : f32 to vector<128x32xf32>
    %16 = arith.maximumf %14, %15 : vector<128x32xf32>
    %c0_12 = arith.constant 0 : index
    %c0_13 = arith.constant 0 : index
    %17 = vector.load %arg6[%c0_12, %c0_13] : memref<1x32xf32, #tpu.memory_space<vmem>>, vector<1x32xf32>
    %18 = vector.broadcast %17 : vector<1x32xf32> to vector<128x32xf32>
    %19 = arith.mulf %16, %18 : vector<128x32xf32>
    %cst_14 = arith.constant dense<0.000000e+00> : vector<128xf32>
    %20 = vector.multi_reduction <add>, %19, %cst_14 [1] : vector<128x32xf32> to vector<128xf32>
    %c0_15 = arith.constant 0 : index
    %c0_16 = arith.constant 0 : index
    %21 = memref.load %arg7[%c0_15, %c0_16] : memref<1x1xf32, #tpu.memory_space<smem>>
    %22 = vector.broadcast %21 : f32 to vector<128xf32>
    %23 = arith.addf %20, %22 : vector<128xf32>
    %c0_17 = arith.constant 0 : index
    %c0_18 = arith.constant 0 : index
    %24 = vector.load %arg8[%c0_17, %c0_18] : memref<1x128xf32, #tpu.memory_space<vmem>>, vector<1x128xf32>
    %25 = vector.shape_cast %24 : vector<1x128xf32> to vector<128xf32>
    %26 = vector.shape_cast %23 : vector<128xf32> to vector<1x128xf32>
    tpu.vector_store %arg8[%c0_17, %c0_18], %26 {strides = array<i32>} : memref<1x128xf32, #tpu.memory_space<vmem>>, vector<1x128xf32>,
    return
  }
  func.func @transform_0(%arg0: i32) -> (i32, i32) {
    %c0_i32 = arith.constant 0 : i32
    %c0_i32_0 = arith.constant 0 : i32
    return %arg0, %c0_i32 : i32, i32
  }
  func.func @transform_1(%arg0: i32) -> (i32, i32) {
    %c0_i32 = arith.constant 0 : i32
    %c0_i32_0 = arith.constant 0 : i32
    %c0_i32_1 = arith.constant 0 : i32
    return %c0_i32, %c0_i32_0 : i32, i32
  }
  func.func @transform_2(%arg0: i32) -> (i32, i32) {
    %c0_i32 = arith.constant 0 : i32
    %c0_i32_0 = arith.constant 0 : i32
    %c0_i32_1 = arith.constant 0 : i32
    return %c0_i32, %c0_i32_0 : i32, i32
  }
  func.func @transform_3(%arg0: i32) -> (i32, i32) {
    %c0_i32 = arith.constant 0 : i32
    %c0_i32_0 = arith.constant 0 : i32
    %c0_i32_1 = arith.constant 0 : i32
    return %c0_i32, %c0_i32_0 : i32, i32
  }
  func.func @transform_4(%arg0: i32) -> (i32, i32) {
    %c0_i32 = arith.constant 0 : i32
    %c0_i32_0 = arith.constant 0 : i32
    %c0_i32_1 = arith.constant 0 : i32
    return %c0_i32, %c0_i32_0 : i32, i32
  }
  func.func @transform_5(%arg0: i32) -> (i32, i32) {
    %c0_i32 = arith.constant 0 : i32
    %c0_i32_0 = arith.constant 0 : i32
    %c0_i32_1 = arith.constant 0 : i32
    return %c0_i32, %c0_i32_0 : i32, i32
  }
  func.func @transform_6(%arg0: i32) -> (i32, i32) {
    %c0_i32 = arith.constant 0 : i32
    %c0_i32_0 = arith.constant 0 : i32
    %c0_i32_1 = arith.constant 0 : i32
    return %c0_i32, %c0_i32_0 : i32, i32
  }
  func.func @transform_7(%arg0: i32) -> (i32, i32) {
    %c0_i32 = arith.constant 0 : i32
    %c0_i32_0 = arith.constant 0 : i32
    return %arg0, %c0_i32 : i32, i32
  }
}

</mosaic_0001>

<bundles_post_ra>
// kernel: discriminator_forward.1
= control target key start
LH: loop header
LB: loop body
LE: loop exit
PB: predicated region body
PF: predicated region fallthrough
CT: control target
= control target key end

     0   :  { %vm283_vm0 = vcmask 523264   ;;  %vm444_vm1 = vcmask 261120   ;;  %vm538_vm2 = vcmask 130112   ;;  %vm545_vm3 = vcmask 195712   ;;  %s1016_s1 = inlined_call_operand.vmem [shape: bf16[128,64], index: 1, kind: input, shape index: {}]   ;;  %s1017_s0 = inlined_call_operand.vmem [shape: f32[128,128], index: 0, kind: input, shape index: {}]   ;;  %s1018_s3 = inlined_call_operand.vmem [shape: bf16[64,32], index: 3, kind: input, shape index: {}]   ;;  %s1019_s2 = inlined_call_operand.vmem [shape: f32[1,64], index: 2, kind: input, shape index: {}]   ;;  %s1020_s4 = inlined_call_operand.vmem [shape: f32[1,32], index: 4, kind: input, shape index: {}]   ;;  %s1021_s5 = inlined_call_operand.vmem [shape: f32[1,32], index: 5, kind: input, shape index: {}]   ;;  %s1022_s6 = inlined_call_operand.<no memory space> [shape: f32[1,1], index: 6, kind: input, shape index: {}]   ;;  %s1023_s7 = inlined_call_operand.vmem [shape: f32[1,128], index: 7, kind: output, shape index: {}]  }
   0x1   :  { %v751_v0 = vld [vmem:[%s1016_s1 + $0x38] sm:$0xff]   ;;  %v752_v1 = vld [vmem:[%s1016_s1 + $0x30] sm:$0xff]   ;;  %v753_v2 = vld [vmem:[%s1016_s1 + $0x28] sm:$0xff]   ;;  %vm552_vm4 = vcmask 261312   ;;  %vm559_vm5 = vcmask 326912   ;;  %vm566_vm6 = vcmask 392512  }
   0x2   :  { %695 = vmatprep.subr.bf16.mxu0 %v751_v0  ;;  %v754_v3 = vld [vmem:[%s1016_s1 + $0x20] sm:$0xff]   ;;  %v29_v5 = vld [vmem:[%s1017_s0 + $0x8] sm:$0xff]  ;;  %v755_v7 = vld [vmem:[%s1016_s1 + $0x18] sm:$0xff]   ;;  %vm573_vm7 = vcmask 458112   ;;  %vm580_vm8 = vcmask 523712   ;;  %vm587_vm9 = vcmask 589312  }
   0x3   :  { %696 = vmatpush3.bf16.msra.mxu0 %v751_v0  ;;  %v28_v4 = vld [vmem:[%s1017_s0] sm:$0xff]  ;;  %v759_v8 = vld [vmem:[%s1018_s3 + $0x18] sm:$0xff]   ;;  %v756_v9 = vld [vmem:[%s1016_s1 + $0x10] sm:$0xff]   ;;  %vm594_vm10 = vcmask 654912   ;;  %vm601_vm11 = vcmask 720512   ;;  %vm608_vm12 = vcmask 786112  }
   0x4   :  { %697 = vmatprep.subr.bf16.mxu0 %v752_v1  ;;  %v44_v6 = vpack.c.bf16 %v29_v5, %v28_v4  ;;  %727 = vmatprep.subr.bf16.mxu1 %v759_v8  ;;  %v757_v10 = vld [vmem:[%s1016_s1 + $0x8] sm:$0xff]   ;;  %v758_v11 = vld [vmem:[%s1016_s1] sm:$0xff]   ;;  %v30_v12 = vld [vmem:[%s1017_s0 + $0x10] sm:$0xff]  ;;  %vm615_vm13 = vcmask 851712   ;;  %vm622_vm14 = vcmask 917312   ;;  %vm629_vm15 = vcmask 982912  }
   0x5   :  { %728 = vmatpush3.bf16.msra.mxu1 %v759_v8  ;;  %v31_v13 = vld [vmem:[%s1017_s0 + $0x18] sm:$0xff]  ;;  %v32_v14 = vld [vmem:[%s1017_s0 + $0x20] sm:$0xff]  ;;  %v33_v15 = vld [vmem:[%s1017_s0 + $0x28] sm:$0xff] }
   0x6   :  { %711 = vmatprep.mubr.bf16.mxu0 %v44_v6  ;;  %v45_v16 = vpack.c.bf16 %v31_v13, %v30_v12  ;;  %v46_v17 = vpack.c.bf16 %v33_v15, %v32_v14  ;;  %v34_v18 = vld [vmem:[%s1017_s0 + $0x30] sm:$0xff]  ;;  %v35_v19 = vld [vmem:[%s1017_s0 + $0x38] sm:$0xff]  ;;  %v36_v20 = vld [vmem:[%s1017_s0 + $0x40] sm:$0xff] }
   0x7   :  { %698 = vmatpush3.bf16.msra.mxu0 %v752_v1  ;;  %v37_v21 = vld [vmem:[%s1017_s0 + $0x48] sm:$0xff]  ;;  %v47_v22 = vpack.c.bf16 %v35_v19, %v34_v18  ;;  %v38_v24 = vld [vmem:[%s1017_s0 + $0x50] sm:$0xff]  ;;  %v39_v25 = vld [vmem:[%s1017_s0 + $0x58] sm:$0xff] }
   0x8   :  { %699 = vmatprep.subr.bf16.mxu0 %v753_v2  ;;  %v48_v23 = vpack.c.bf16 %v37_v21, %v36_v20  ;;  %v40_v26 = vld [vmem:[%s1017_s0 + $0x60] sm:$0xff]  ;;  %v41_v27 = vld [vmem:[%s1017_s0 + $0x68] sm:$0xff]  ;;  %v49_v28 = vpack.c.bf16 %v39_v25, %v38_v24  ;;  %v42_v30 = vld [vmem:[%s1017_s0 + $0x70] sm:$0xff] }
   0x9   :  { %v50_v29 = vpack.c.bf16 %v41_v27, %v40_v26  ;;  %v43_v31 = vld [vmem:[%s1017_s0 + $0x78] sm:$0xff]  ;;  %v760_v33 = vld [vmem:[%s1018_s3 + $0x10] sm:$0xff]   ;;  %v761_v34 = vld [vmem:[%s1018_s3 + $0x8] sm:$0xff]  }
   0xa   :  { %v51_v32 = vpack.c.bf16 %v43_v31, %v42_v30  ;;  %729 = vmatprep.subr.bf16.mxu1 %v760_v33  ;;  %v762_v35 = vld [vmem:[%s1018_s3] sm:$0xff]  }
   0xb   :  { %700 = vmatpush3.bf16.msra.mxu0 %v753_v2  ;;  %730 = vmatpush3.bf16.msra.mxu1 %v760_v33  ;;  %v644_v38 = vld [vmem:[%s1019_s2] ss:$0 sm:$0xff] }
   0xc   :  { %701 = vmatprep.subr.bf16.mxu0 %v754_v3  ;;  %731 = vmatprep.subr.bf16.mxu1 %v761_v34  ;;  %v907_v33 = vld [vmem:[%s1021_s5] ss:$0 sm:$0xff] }
   0xf   :  { %702 = vmatpush3.bf16.msra.mxu0 %v754_v3  ;;  %732 = vmatpush3.bf16.msra.mxu1 %v761_v34 }
  0x10   :  { %703 = vmatprep.subr.bf16.mxu0 %v755_v7  ;;  %733 = vmatprep.subr.bf16.mxu1 %v762_v35 }
  0x13   :  { %704 = vmatpush3.bf16.msra.mxu0 %v755_v7  ;;  %734 = vmatpush3.bf16.msra.mxu1 %v762_v35 }
  0x14   :  { %705 = vmatprep.subr.bf16.mxu0 %v756_v9 }
  0x17   :  { %706 = vmatpush3.bf16.msra.mxu0 %v756_v9 }
  0x18   :  { %707 = vmatprep.subr.bf16.mxu0 %v757_v10 }
  0x1b   :  { %708 = vmatpush3.bf16.msra.mxu0 %v757_v10 }
  0x1c   :  { %709 = vmatprep.subr.bf16.mxu0 %v758_v11 }
  0x1f   :  { %710 = vmatpush3.bf16.msra.mxu0 %v758_v11 }
  0x22   :  { %712 = vmatmul.mubr.bf16.vlgmr.msra.gmra.mxu0 %v45_v16 }
  0x23   :  { %715 = vmatprep.mubr.bf16.mxu0 %v46_v17 }
  0x2a   :  { %716 = vmatmul.mubr.bf16.gmra.mxu0 %v47_v22 }
  0x2b   :  { %719 = vmatprep.mubr.bf16.mxu0 %v48_v23 }
  0x32   :  { %720 = vmatmul.mubr.bf16.gmra.mxu0 %v49_v28 }
  0x33   :  { %723 = vmatprep.mubr.bf16.mxu0 %v50_v29  ;;  %v901_v29 = vld [vmem:[%s1020_s4] ss:$0 sm:$0xff] }
  0x3a   :  { %724 = vmatmul.mubr.bf16.gmra.mxu0 %v51_v32 }
  0xe2   :  { %v713_v36 = vpop.f32.mrf.mxu0 }
  0xe3   :  { %v166_v42 = vadd.f32 %v713_v36, %v644_v38 }
  0xe4   :  { %v157_v37 = vpop.f32.mrf.mxu0 }
  0xe5   :  { %v158_v40 = vadd.f32 %v644_v38, %v157_v37  ;;  %v222_v49 = vmax.f32 %v166_v42, 0.0 }
  0xe6   :  { %v714_v39 = vpop.f32.mrf.mxu0 }
  0xe7   :  { %v169_v41 = vadd.f32 %v714_v39, %v644_v38  ;;  %v220_v47 = vmax.f32 %v158_v40, 0.0 }
  0xe8   :  { %v160_v43 = vpop.f32.mrf.mxu0 }
  0xe9   :  { %v161_v44 = vadd.f32 %v644_v38, %v160_v43  ;;  %v223_v45 = vmax.f32 %v169_v41, 0.0 }
  0xea   :  { %v717_v46 = vpop.f32.mrf.mxu0 }
  0xeb   :  { %v221_v48 = vmax.f32 %v161_v44, 0.0  ;;  %v237_v52 = vpack.c.bf16 %v223_v45, %v222_v49  ;;  %v182_v56 = vadd.f32 %v717_v46, %v644_v38 }
  0xec   :  { %v173_v50 = vpop.f32.mrf.mxu0 }
  0xed   :  { %v236_v51 = vpack.c.bf16 %v221_v48, %v220_v47  ;;  %v174_v54 = vadd.f32 %v644_v38, %v173_v50  ;;  %v226_v63 = vmax.f32 %v182_v56, 0.0 }
  0xee   :  { %v718_v53 = vpop.f32.mrf.mxu0 }
  0xef   :  { %v185_v55 = vadd.f32 %v718_v53, %v644_v38  ;;  %735 = vmatprep.mubr.msk.bf16.mxu1 %vm283_vm0, %v236_v51  ;;  %v224_v61 = vmax.f32 %v174_v54, 0.0 }
  0xf0   :  { %v176_v57 = vpop.f32.mrf.mxu0  ;;  %736 = vmatmul.mubr.msk.bf16.vlgmr.msra.gmra.mxu1 %vm283_vm0, %v237_v52 }
  0xf1   :  { %v177_v58 = vadd.f32 %v644_v38, %v176_v57  ;;  %v227_v59 = vmax.f32 %v185_v55, 0.0 }
  0xf2   :  { %v721_v60 = vpop.f32.mrf.mxu0 }
  0xf3   :  { %v225_v62 = vmax.f32 %v177_v58, 0.0  ;;  %v239_v2 = vpack.c.bf16 %v227_v59, %v226_v63  ;;  %v198_v6 = vadd.f32 %v721_v60, %v644_v38 }
  0xf4   :  { %v189_v0 = vpop.f32.mrf.mxu0 }
  0xf5   :  { %v238_v1 = vpack.c.bf16 %v225_v62, %v224_v61  ;;  %v190_v4 = vadd.f32 %v644_v38, %v189_v0  ;;  %v230_v13 = vmax.f32 %v198_v6, 0.0 }
  0xf6   :  { %v722_v3 = vpop.f32.mrf.mxu0 }
  0xf7   :  { %v201_v5 = vadd.f32 %v722_v3, %v644_v38  ;;  %739 = vmatprep.mubr.msk.bf16.mxu1 %vm283_vm0, %v238_v1  ;;  %v228_v11 = vmax.f32 %v190_v4, 0.0 }
  0xf8   :  { %v192_v7 = vpop.f32.mrf.mxu0  ;;  %740 = vmatmul.mubr.msk.bf16.gmra.mxu1 %vm283_vm0, %v239_v2 }
  0xf9   :  { %v193_v8 = vadd.f32 %v644_v38, %v192_v7  ;;  %v231_v9 = vmax.f32 %v201_v5, 0.0 }
  0xfa   :  { %v725_v10 = vpop.f32.mrf.mxu0 }
  0xfb   :  { %v229_v12 = vmax.f32 %v193_v8, 0.0  ;;  %v241_v16 = vpack.c.bf16 %v231_v9, %v230_v13  ;;  %v214_v20 = vadd.f32 %v725_v10, %v644_v38 }
  0xfc   :  { %v205_v14 = vpop.f32.mrf.mxu0 }
  0xfd   :  { %v240_v15 = vpack.c.bf16 %v229_v12, %v228_v11  ;;  %v206_v18 = vadd.f32 %v644_v38, %v205_v14  ;;  %v234_v26 = vmax.f32 %v214_v20, 0.0 }
  0xfe   :  { %v726_v17 = vpop.f32.mrf.mxu0 }
  0xff   :  { %v217_v19 = vadd.f32 %v726_v17, %v644_v38  ;;  %743 = vmatprep.mubr.msk.bf16.mxu1 %vm283_vm0, %v240_v15  ;;  %v232_v24 = vmax.f32 %v206_v18, 0.0 }
 0x100   :  { %v208_v21 = vpop.f32.mrf.mxu0  ;;  %744 = vmatmul.mubr.msk.bf16.gmra.mxu1 %vm283_vm0, %v241_v16 }
 0x101   :  { %v209_v22 = vadd.f32 %v644_v38, %v208_v21  ;;  %v235_v23 = vmax.f32 %v217_v19, 0.0 }
 0x103   :  { %v233_v25 = vmax.f32 %v209_v22, 0.0  ;;  %v243_v28 = vpack.c.bf16 %v235_v23, %v234_v26 }
 0x105   :  { %v242_v27 = vpack.c.bf16 %v233_v25, %v232_v24 }
 0x107   :  { %747 = vmatprep.mubr.msk.bf16.mxu1 %vm283_vm0, %v242_v27 }
 0x108   :  { %748 = vmatmul.mubr.msk.bf16.gmra.mxu1 %vm283_vm0, %v243_v28  ;;  %vm636_vm0 = vcmask 1048512  }
 0x1b0   :  { %v737_v30 = vpop.f32.mrf.mxu1 }
 0x1b1   :  { %v351_v31 = vadd.f32 %v737_v30, %v901_v29 }
 0x1b2   :  { %v342_v32 = vpop.f32.mrf.mxu1 }
 0x1b3   :  { %v407_v34 = vmax.f32 %v351_v31, 0.0  ;;  %v343_v35 = vadd.f32 %v901_v29, %v342_v32 }
 0x1b4   :  { %v738_v36 = vpop.f32.mrf.mxu1 }
 0x1b5   :  { %v405_v37 = vmax.f32 %v343_v35, 0.0  ;;  %v354_v38 = vadd.f32 %v738_v36, %v901_v29  ;;  %v430_v39 = vmul.f32 %v907_v33, %v407_v34 }
 0x1b6   :  { %v345_v40 = vpop.f32.mrf.mxu1 }
 0x1b7   :  { %v408_v41 = vmax.f32 %v354_v38, 0.0  ;;  %v346_v42 = vadd.f32 %v901_v29, %v345_v40  ;;  %v451_v43 = vsel %vm444_vm1, %v430_v39, 0.0  ;;  %v428_v44 = vmul.f32 %v907_v33, %v405_v37 }
 0x1b8   :  { %452 = vadd.xlane.f32.xlu1 %v451_v43  ;;  %v741_v45 = vpop.f32.mrf.mxu1 }
 0x1b9   :  { %v406_v46 = vmax.f32 %v346_v42, 0.0  ;;  %v367_v47 = vadd.f32 %v741_v45, %v901_v29  ;;  %v445_v48 = vsel %vm444_vm1, %v428_v44, 0.0  ;;  %v431_v49 = vmul.f32 %v907_v33, %v408_v41 }
 0x1ba   :  { %v358_v50 = vpop.f32.mrf.mxu1  ;;  %446 = vadd.xlane.f32.xlu0 %v445_v48  ;;  %v527_v48 = vlaneseq }
 0x1bb   :  { %v411_v51 = vmax.f32 %v367_v47, 0.0  ;;  %v359_v52 = vadd.f32 %v901_v29, %v358_v50  ;;  %v454_v53 = vsel %vm444_vm1, %v431_v49, 0.0  ;;  %v429_v54 = vmul.f32 %v907_v33, %v406_v46 }
 0x1bc   :  { %455 = vadd.xlane.f32.xlu1 %v454_v53  ;;  %v742_v55 = vpop.f32.mrf.mxu1  ;;  %v956_v49 = vand.u32 127, %v527_v48  ;;  %v959_v53 = vshrl.u32 %v527_v48, 7 }
 0x1bd   :  { %v409_v56 = vmax.f32 %v359_v52, 0.0  ;;  %v370_v57 = vadd.f32 %v742_v55, %v901_v29  ;;  %v448_v58 = vsel %vm444_vm1, %v429_v54, 0.0  ;;  %v434_v59 = vmul.f32 %v907_v33, %v411_v51 }
 0x1be   :  { %v361_v60 = vpop.f32.mrf.mxu1  ;;  %449 = vadd.xlane.f32.xlu0 %v448_v58  ;;  %v533_v50 = vadd.s32 4294967288, %v956_v49  ;;  %v540_v54 = vadd.s32 4294967280, %v956_v49 }
 0x1bf   :  { %v412_v61 = vmax.f32 %v370_v57, 0.0  ;;  %v362_v62 = vadd.f32 %v901_v29, %v361_v60  ;;  %v463_v0 = vsel %vm444_vm1, %v434_v59, 0.0  ;;  %v432_v4 = vmul.f32 %v907_v33, %v409_v56 }
 0x1c0   :  { %v745_v63 = vpop.f32.mrf.mxu1  ;;  %v536_v55 = vsub.s32 %v533_v50, %v959_v53  ;;  %v531_v56 = vsub.s32 %v956_v49, %v959_v53  ;;  %v547_v59 = vadd.s32 4294967272, %v956_v49 }
 0x1c1   :  { %v410_v1 = vmax.f32 %v362_v62, 0.0  ;;  %v383_v2 = vadd.f32 %v745_v63, %v901_v29  ;;  %v435_v3 = vmul.f32 %v907_v33, %v412_v61  ;;  %v457_v13 = vsel %vm444_vm1, %v432_v4, 0.0 }
 0x1c2   :  { %v374_v5 = vpop.f32.mrf.mxu1  ;;  %464 = vadd.xlane.f32.xlu0 %v463_v0  ;;  %v543_v61 = vsub.s32 %v540_v54, %v959_v53  ;;  %v550_v4 = vsub.s32 %v547_v59, %v959_v53 }
 0x1c3   :  { %v415_v6 = vmax.f32 %v383_v2, 0.0  ;;  %v375_v7 = vadd.f32 %v901_v29, %v374_v5  ;;  %v466_v8 = vsel %vm444_vm1, %v435_v3, 0.0  ;;  %v433_v9 = vmul.f32 %v907_v33, %v410_v1 }
 0x1c4   :  { %467 = vadd.xlane.f32.xlu1 %v466_v8  ;;  %v746_v10 = vpop.f32.mrf.mxu1  ;;  %v554_v1 = vadd.s32 4294967264, %v956_v49  ;;  %v561_v5 = vadd.s32 4294967256, %v956_v49  ;;  %v568_v8 = vadd.s32 4294967248, %v956_v49 }
 0x1c5   :  { %v413_v11 = vmax.f32 %v375_v7, 0.0  ;;  %v386_v12 = vadd.f32 %v746_v10, %v901_v29  ;;  %v438_v14 = vmul.f32 %v907_v33, %v415_v6  ;;  %v460_v18 = vsel %vm444_vm1, %v433_v9, 0.0 }
 0x1c6   :  { %v377_v15 = vpop.f32.mrf.mxu1  ;;  %458 = vadd.xlane.f32.xlu0 %v457_v13 }
 0x1c7   :  { %v416_v16 = vmax.f32 %v386_v12, 0.0  ;;  %v378_v17 = vadd.f32 %v901_v29, %v377_v15  ;;  %v475_v20 = vsel %vm444_vm1, %v438_v14, 0.0  ;;  %v436_v24 = vmul.f32 %v907_v33, %v413_v11 }
 0x1c8   :  { %v749_v19 = vpop.f32.mrf.mxu1  ;;  %461 = vadd.xlane.f32.xlu1 %v460_v18  ;;  %v557_v11 = vsub.s32 %v554_v1, %v959_v53  ;;  %v564_v15 = vsub.s32 %v561_v5, %v959_v53  ;;  %v575_v18 = vadd.s32 4294967240, %v956_v49  ;;  %v631_v1 = vadd.s32 4294967176, %v956_v49 }
 0x1c9   :  { %v414_v21 = vmax.f32 %v378_v17, 0.0  ;;  %v399_v22 = vadd.f32 %v749_v19, %v901_v29  ;;  %v439_v23 = vmul.f32 %v907_v33, %v416_v16  ;;  %v469_v35 = vsel %vm444_vm1, %v436_v24, 0.0 }
 0x1ca   :  { %v390_v25 = vpop.f32.mrf.mxu1  ;;  %476 = vadd.xlane.f32.xlu0 %v475_v20  ;;  %v571_v17 = vsub.s32 %v568_v8, %v959_v53 }
 0x1cb   :  { %v391_v26 = vadd.f32 %v901_v29, %v390_v25  ;;  %v478_v27 = vsel %vm444_vm1, %v439_v23, 0.0  ;;  %v437_v28 = vmul.f32 %v907_v33, %v414_v21  ;;  %v419_v31 = vmax.f32 %v399_v22, 0.0 }
 0x1cc   :  { %v750_v30 = vpop.f32.mrf.mxu1  ;;  %479 = vadd.xlane.f32.xlu1 %v478_v27  ;;  %v582_v23 = vadd.s32 4294967232, %v956_v49  ;;  %v596_v25 = vadd.s32 4294967216, %v956_v49 }
 0x1cd   :  { %v417_v32 = vmax.f32 %v391_v26, 0.0  ;;  %v402_v34 = vadd.f32 %v750_v30, %v901_v29  ;;  %v472_v38 = vsel %vm444_vm1, %v437_v28, 0.0  ;;  %v442_v43 = vmul.f32 %v907_v33, %v419_v31 }
 0x1ce   :  { %v393_v36 = vpop.f32.mrf.mxu1  ;;  %470 = vadd.xlane.f32.xlu0 %v469_v35  ;;  %v589_v30 = vadd.s32 4294967224, %v956_v49  ;;  %v578_v31 = vsub.s32 %v575_v18, %v959_v53 }
 0x1cf   :  { %v394_v37 = vadd.f32 %v901_v29, %v393_v36  ;;  %v440_v39 = vmul.f32 %v907_v33, %v417_v32  ;;  %v420_v40 = vmax.f32 %v402_v34, 0.0  ;;  %v487_v46 = vsel %vm444_vm1, %v442_v43, 0.0 }
 0x1d0   :  { %473 = vadd.xlane.f32.xlu1 %v472_v38  ;;  %v603_v34 = vadd.s32 4294967208, %v956_v49  ;;  %v585_v38 = vsub.s32 %v582_v23, %v959_v53 }
 0x1d1   :  { %v418_v41 = vmax.f32 %v394_v37, 0.0  ;;  %v481_v42 = vsel %vm444_vm1, %v440_v39, 0.0  ;;  %v443_v29 = vmul.f32 %v907_v33, %v420_v40  ;;  %v599_v39 = vsub.s32 %v596_v25, %v959_v53 }
 0x1d2   :  { %482 = vadd.xlane.f32.xlu0 %v481_v42 }
 0x1d3   :  { %v441_v44 = vmul.f32 %v907_v33, %v418_v41  ;;  %v490_v47 = vsel %vm444_vm1, %v443_v29, 0.0  ;;  %v965_v33 = vstv %s1022_s6  ;;  %v610_v41 = vadd.s32 4294967200, %v956_v49 }
 0x1d4   :  { %v606_v29 = vsub.s32 %v603_v34, %v959_v53 }
 0x1d5   :  { %v484_v45 = vsel %vm444_vm1, %v441_v44, 0.0  ;;  %v592_v44 = vsub.s32 %v589_v30, %v959_v53 }
 0x1d6   :  { %485 = vadd.xlane.f32.xlu1 %v484_v45  ;;  %488 = vadd.xlane.f32.xlu0 %v487_v46 }
 0x1da   :  { %491 = vadd.xlane.f32.xlu1 %v490_v47 }
 0x241   :  { %v453_v51 = vpop.xlane.xlu1 %452 }
 0x242   :  { %v497_v63 = vadd.f32 %v965_v33, %v453_v51 }
 0x243   :  { %v447_v52 = vpop.xlane.xlu0 %446 }
 0x244   :  { %v495_v57 = vadd.f32 %v965_v33, %v447_v52  ;;  %v544_v10 = vrot.slane %v497_v63, %v543_v61  ;;  %v617_v52 = vadd.s32 4294967192, %v956_v49 }
 0x245   :  { %v456_v62 = vpop.xlane.xlu1 %455 }
 0x246   :  { %v532_v2 = vrot.slane %v495_v57, %v531_v56  ;;  %v498_v6 = vadd.f32 %v965_v33, %v456_v62  ;;  %v624_v57 = vadd.s32 4294967184, %v956_v49 }
 0x247   :  { %v450_v58 = vpop.xlane.xlu0 %449 }
 0x248   :  { %v496_v60 = vadd.f32 %v965_v33, %v450_v58  ;;  %v551_v16 = vrot.slane %v498_v6, %v550_v4  ;;  %v627_v5 = vsub.s32 %v624_v57, %v959_v53 }
 0x24a   :  { %v537_v0 = vrot.slane %v496_v60, %v536_v55  ;;  %v613_v55 = vsub.s32 %v610_v41, %v959_v53 }
 0x24b   :  { %v465_v3 = vpop.xlane.xlu0 %464 }
 0x24c   :  { %v539_v7 = vsel %vm538_vm2, %v537_v0, %v532_v2  ;;  %v501_v20 = vadd.f32 %v965_v33, %v465_v3  ;;  %v620_v0 = vsub.s32 %v617_v52, %v959_v53 }
 0x24d   :  { %v468_v9 = vpop.xlane.xlu1 %467  ;;  %v546_v13 = vsel %vm545_vm3, %v544_v10, %v539_v7 }
 0x24e   :  { %v553_v24 = vsel %vm552_vm4, %v551_v16, %v546_v13  ;;  %v502_v32 = vadd.f32 %v965_v33, %v468_v9  ;;  %v572_v36 = vrot.slane %v501_v20, %v571_v17 }
 0x24f   :  { %v459_v12 = vpop.xlane.xlu0 %458 }
 0x250   :  { %v499_v14 = vadd.f32 %v965_v33, %v459_v12  ;;  %v579_v45 = vrot.slane %v502_v32, %v578_v31 }
 0x251   :  { %v462_v19 = vpop.xlane.xlu1 %461 }
 0x252   :  { %v558_v21 = vrot.slane %v499_v14, %v557_v11  ;;  %v500_v22 = vadd.f32 %v965_v33, %v462_v19  ;;  %v634_v11 = vsub.s32 %v631_v1, %v959_v53 }
 0x253   :  { %v477_v26 = vpop.xlane.xlu0 %476 }
 0x254   :  { %v560_v27 = vsel %vm559_vm5, %v558_v21, %v553_v24  ;;  %v565_v28 = vrot.slane %v500_v22, %v564_v15  ;;  %v505_v46 = vadd.f32 %v965_v33, %v477_v26 }
 0x255   :  { %v480_v35 = vpop.xlane.xlu1 %479 }
 0x256   :  { %v567_v37 = vsel %vm566_vm6, %v565_v28, %v560_v27  ;;  %v506_v48 = vadd.f32 %v965_v33, %v480_v35  ;;  %v600_v61 = vrot.slane %v505_v46, %v599_v39 }
 0x257   :  { %v471_v40 = vpop.xlane.xlu0 %470  ;;  %v574_v42 = vsel %vm573_vm7, %v572_v36, %v567_v37 }
 0x258   :  { %v503_v43 = vadd.f32 %v965_v33, %v471_v40  ;;  %v581_v54 = vsel %vm580_vm8, %v579_v45, %v574_v42  ;;  %v607_v62 = vrot.slane %v506_v48, %v606_v29 }
 0x259   :  { %v474_v47 = vpop.xlane.xlu1 %473 }
 0x25a   :  { %v586_v50 = vrot.slane %v503_v43, %v585_v38  ;;  %v504_v51 = vadd.f32 %v965_v33, %v474_v47 }
 0x25b   :  { %v483_v56 = vpop.xlane.xlu0 %482 }
 0x25c   :  { %v588_v58 = vsel %vm587_vm9, %v586_v50, %v581_v54  ;;  %v593_v59 = vrot.slane %v504_v51, %v592_v44  ;;  %v507_v60 = vadd.f32 %v965_v33, %v483_v56 }
 0x25e   :  { %v595_v63 = vsel %vm594_vm10, %v593_v59, %v588_v58  ;;  %v614_v3 = vrot.slane %v507_v60, %v613_v55 }
 0x25f   :  { %v602_v2 = vsel %vm601_vm11, %v600_v61, %v595_v63  ;;  %v486_v4 = vpop.xlane.xlu1 %485  ;;  %v489_v6 = vpop.xlane.xlu0 %488 }
 0x260   :  { %v609_v7 = vsel %vm608_vm12, %v607_v62, %v602_v2  ;;  %v508_v8 = vadd.f32 %v965_v33, %v486_v4  ;;  %v509_v9 = vadd.f32 %v965_v33, %v489_v6 }
 0x261   :  { %v616_v12 = vsel %vm615_vm13, %v614_v3, %v609_v7 }
 0x262   :  { %v621_v10 = vrot.slane %v508_v8, %v620_v0  ;;  %v628_v13 = vrot.slane %v509_v9, %v627_v5 }
 0x263   :  { %v492_v14 = vpop.xlane.xlu1 %491 }
 0x264   :  { %v623_v49 = vsel %vm622_vm14, %v621_v10, %v616_v12  ;;  %v510_v15 = vadd.f32 %v965_v33, %v492_v14 }
 0x265   :  { %v630_v17 = vsel %vm629_vm15, %v628_v13, %v623_v49 }
 0x266   :  { %v635_v16 = vrot.slane %v510_v15, %v634_v11 }
 0x268   :  { %v637_v18 = vsel %vm636_vm0, %v635_v16, %v630_v17 }
 0x269   :  { %639 = vst [vmem:[%s1023_s7] sm:$0x1] %v637_v18 }

</bundles_post_ra>
